<compile_context>
chip_gen: v7x
topology: tpu7x:2x2x1
jax: 0.10.0
libtpu: 0.0.40
codegen_flags: <defaults>
</compile_context>

<pallas_src>
import jax
import jax.numpy as jnp
from jax.experimental import pallas as pl
from jax.experimental.pallas import tpu as pltpu

BN_EPS = 1e-5


def _round_up(x, m):
    return (x + m - 1) // m * m


def _cdiv(a, b):
    return (a + b - 1) // b


def _vmem_capacity_bytes():
    try:
        return int(pltpu.get_tpu_info().vmem_capacity_bytes)
    except Exception:
        return 64 << 20  # conservative: v7x per-TensorCore VMEM


# ----------------------------------------------------------------------------------
# Kernels
# ----------------------------------------------------------------------------------
def _make_reduce_kernel(n_valid):
    """Conv-as-GEMM + BatchNorm2d (training-mode batch stats over the real rows)."""
    inv_n = 1.0 / float(n_valid)

    def kernel(x_ref, wconv_ref, gamma_ref, beta_ref, reduce_ref, rbf16_ref):
        # (n_p, cin_p) bf16 @ (cin_p, cout_p) bf16 -> f32 on the MXU.
        y = jnp.dot(x_ref[...], wconv_ref[...], preferred_element_type=jnp.float32)

        # Padded rows (>= n_valid) of x are exactly zero, so they contribute nothing
        # to either sum: no masking passes needed.  Biased (1/N) variance via
        # E[y^2] - mu^2, clamped at 0 for numerical safety.
        mu = jnp.sum(y, axis=0, keepdims=True) * inv_n
        ex2 = jnp.sum(y * y, axis=0, keepdims=True) * inv_n
        var = jnp.maximum(ex2 - mu * mu, 0.0)

        # Fused BN: reduce = y * scale + shift (single FMA pass over the tile).
        scale = gamma_ref[...] * jax.lax.rsqrt(var + BN_EPS)
        shift = beta_ref[...] - mu * scale
        reduce = y * scale + shift

        reduce_ref[...] = reduce                       # f32 output
        rbf16_ref[...] = reduce.astype(jnp.bfloat16)   # bf16 operand for the fc GEMM

    return kernel


def _fc_kernel(rbf16_ref, wfc_ref, fc_ref):
    # (n_p, cout_p) bf16 @ (cout_p, tn) bf16 -> (n_p, tn) f32 on the MXU.
    # wfc_ref block is (1, cout_p, tn) (tile-major layout); squeeze the leading dim.
    fc_ref[...] = jnp.dot(rbf16_ref[...], wfc_ref[0],
                          preferred_element_type=jnp.float32)


# ----------------------------------------------------------------------------------
# Parameter preparation (hoisted, once per model)
# ----------------------------------------------------------------------------------
def prepare_params(w_conv, bn_gamma, bn_beta, w_fc, *, class_tile=1024):
    """w_conv: (feat_out, feat_in, 1, 1); bn_gamma/bn_beta: (feat_out,);
    w_fc: (num_classes, feat_out)."""
    feat_out, feat_in = int(w_conv.shape[0]), int(w_conv.shape[1])
    num_classes = int(w_fc.shape[0])

    cin_p = _round_up(feat_in, 128)
    cout_p = _round_up(feat_out, 128)
    nc_128 = _round_up(num_classes, 128)

    # VMEM-aware class tile: cap so triple-buffered weight tiles use <= ~half the
    # device VMEM, then pick the multiple of 128 that minimizes class-axis padding
    # (e.g. num_classes=1025 -> tn=640, nc_p=1280 instead of 2048).
    budget = max(_vmem_capacity_bytes() - (8 << 20), 16 << 20)
    max_tn = max(128, (budget // 2) // (3 * cout_p * 2) // 128 * 128)
    ct = max(128, min(int(class_tile), max_tn) // 128 * 128)
    nt = _cdiv(nc_128, ct)
    tn = 128 * _cdiv(nc_128 // 128, nt)
    nc_p = nt * tn

    wconv_t = jnp.zeros((cin_p, cout_p), jnp.bfloat16)
    wconv_t = wconv_t.at[:feat_in, :feat_out].set(
        w_conv.reshape(feat_out, feat_in).T.astype(jnp.bfloat16))

    gamma = jnp.zeros((1, cout_p), jnp.float32)
    gamma = gamma.at[0, :feat_out].set(bn_gamma.astype(jnp.float32))
    beta = jnp.zeros((1, cout_p), jnp.float32)
    beta = beta.at[0, :feat_out].set(bn_beta.astype(jnp.float32))

    # fc weight: transpose, pad, and store tile-major (nt, cout_p, tn) so each
    # class-tile DMA is one contiguous HBM region.
    wfc_pad = jnp.zeros((cout_p, nc_p), jnp.bfloat16)
    wfc_pad = wfc_pad.at[:feat_out, :num_classes].set(w_fc.T.astype(jnp.bfloat16))
    wfc_tiles = wfc_pad.reshape(cout_p, nt, tn).transpose(1, 0, 2)

    dims = dict(feat_in=feat_in, feat_out=feat_out, num_classes=num_classes,
                cin_p=cin_p, cout_p=cout_p, nc_p=nc_p, tn=tn, nt=nt)
    return (wconv_t, gamma, beta, wfc_tiles), dims


# ----------------------------------------------------------------------------------
# Forward
# ----------------------------------------------------------------------------------
def _build_and_run(x2d, wconv_t, gamma, beta, wfc_tiles, n_valid,
                   n_p, cin_p, cout_p, tn, nt, nc_p, use_buffer_hints):
    cap = _vmem_capacity_bytes()

    def spec(block_shape, index_map, buffers=None):
        """BlockSpec with an optional buffer-count hint (falls back if unsupported)."""
        if buffers is None or not use_buffer_hints or not hasattr(pl, "Buffered"):
            return pl.BlockSpec(block_shape, index_map)
        try:
            return pl.BlockSpec(block_shape, index_map,
                                pipeline_mode=pl.Buffered(buffers))
        except TypeError:
            return pl.BlockSpec(block_shape, index_map)

    # ---- Kernel A: conv-as-GEMM + BatchNorm (single grid step) -----------------
    # TODO(synk): tile the conv GEMM's K (cin) dimension if cin_p*cout_p*2 ever
    # exceeds the VMEM budget; at typical ReductionFc sizes wconv fits resident.
    vmem_a = (n_p * cin_p * 2 + cin_p * cout_p * 2 + 2 * cout_p * 4
              + n_p * cout_p * (4 + 2)          # f32 + bf16 outputs
              + 3 * n_p * cout_p * 4)           # y / y*y / fused-BN temporaries
    vmem_a = int(min(max(2 * vmem_a, 16 << 20), cap - (4 << 20)))

    reduce_p, rbf16 = pl.pallas_call(
        _make_reduce_kernel(n_valid),
        out_shape=(jax.ShapeDtypeStruct((n_p, cout_p), jnp.float32),
                   jax.ShapeDtypeStruct((n_p, cout_p), jnp.bfloat16)),
        grid_spec=pltpu.PrefetchScalarGridSpec(
            num_scalar_prefetch=0,
            grid=(1,),
            in_specs=[
                spec((n_p, cin_p), lambda i: (0, 0), buffers=1),      # x (resident)
                spec((cin_p, cout_p), lambda i: (0, 0), buffers=1),   # conv weight
                spec((1, cout_p), lambda i: (0, 0), buffers=1),       # BN gamma
                spec((1, cout_p), lambda i: (0, 0), buffers=1),       # BN beta
            ],
            out_specs=(
                spec((n_p, cout_p), lambda i: (0, 0), buffers=1),     # reduce f32
                spec((n_p, cout_p), lambda i: (0, 0), buffers=1),     # reduce bf16
            ),
        ),
        compiler_params=pltpu.CompilerParams(
            dimension_semantics=("arbitrary",),
            vmem_limit_bytes=vmem_a,
        ),
    )(x2d, wconv_t, gamma, beta)

    # ---- Kernel B: class-tiled fc GEMM (parallel over class tiles) -------------
    res_mult = 1 if use_buffer_hints else 2
    resident_b = res_mult * n_p * cout_p * 2          # reduce_bf16 activations
    out_tile_b = 2 * n_p * tn * 4                     # double-buffered fc out tile
    wfc_bufs = 3 if (use_buffer_hints and
                     resident_b + 3 * cout_p * tn * 2 + out_tile_b
                     <= cap - (8 << 20)) else 2
    vmem_b = resident_b + wfc_bufs * cout_p * tn * 2 + out_tile_b
    vmem_b = int(min(max(2 * vmem_b, 16 << 20), cap - (4 << 20)))

    fc_p = pl.pallas_call(
        _fc_kernel,
        out_shape=jax.ShapeDtypeStruct((n_p, nc_p), jnp.float32),
        grid_spec=pltpu.PrefetchScalarGridSpec(
            num_scalar_prefetch=0,
            grid=(nt,),
            in_specs=[
                spec((n_p, cout_p), lambda j: (0, 0), buffers=1),     # resident acts
                spec((1, cout_p, tn), lambda j: (j, 0, 0),
                     buffers=wfc_bufs),                               # streamed weights
            ],
            out_specs=pl.BlockSpec((n_p, tn), lambda j: (0, j)),      # lane-dense out
        ),
        compiler_params=pltpu.CompilerParams(
            dimension_semantics=("parallel",),   # class tiles shard across TCs on v7x
            vmem_limit_bytes=vmem_b,
        ),
    )(rbf16, wfc_tiles)

    jax.block_until_ready((reduce_p, fc_p))
    return reduce_p, fc_p


def reduction_fc_forward(x_nchw, prepared, dims):
    """x_nchw: (N, feat_in, 1, 1).  Returns (reduce (N, feat_out), fc (N, num_classes))."""
    wconv_t, gamma, beta, wfc_tiles = prepared
    N, Cin, H, W = x_nchw.shape
    assert H == 1 and W == 1, "ReductionFc expects 1x1 spatial input"
    assert Cin == dims["feat_in"]

    cin_p, cout_p = dims["cin_p"], dims["cout_p"]
    nc_p, tn, nt = dims["nc_p"], dims["tn"], dims["nt"]

    # bf16 sublane packing for small batches; full 256-row MXU tiles once the
    # fc phase turns MXU-bound at large N.
    N = int(N)
    n_p = _round_up(N, 256) if N >= 256 else _round_up(max(N, 1), 16)

    x2d = jnp.zeros((n_p, cin_p), jnp.bfloat16)
    x2d = x2d.at[:N, :Cin].set(x_nchw.reshape(N, Cin).astype(jnp.bfloat16))

    args = (x2d, wconv_t, gamma, beta, wfc_tiles, N, n_p, cin_p, cout_p, tn, nt, nc_p)
    try:
        reduce_p, fc_p = _build_and_run(*args, use_buffer_hints=True)
    except Exception:
        # pipeline_mode / pl.Buffered rejected by this jax/Mosaic build: rebuild with
        # default double-buffering (correctness unchanged, slightly more VMEM).
        reduce_p, fc_p = _build_and_run(*args, use_buffer_hints=False)

    # NOTE: padded rows (>= N) of reduce_p hold the BN `shift` (beta - mu*scale),
    # not zero; they are sliced away here and must never be consumed directly.
    reduce = reduce_p[:N, :dims["feat_out"]]
    fc = fc_p[:N, :dims["num_classes"]]
    return reduce, fc


# ----------------------------------------------------------------------------------
# Init (matches the PyTorch module's initializers) + reference + test
# ----------------------------------------------------------------------------------
def init_params(key, feat_in, feat_out, num_classes):
    k_conv, k_bn, k_fc = jax.random.split(key, 3)
    # kaiming_normal_(conv.weight, mode='fan_in'): fan_in = feat_in*1*1, gain=sqrt(2)
    conv_std = jnp.sqrt(2.0 / feat_in)
    w_conv = conv_std * jax.random.normal(k_conv, (feat_out, feat_in, 1, 1), jnp.float32)
    # BN: weight ~ N(1.0, 0.02), bias = 0
    bn_gamma = 1.0 + 0.02 * jax.random.normal(k_bn, (feat_out,), jnp.float32)
    bn_beta = jnp.zeros((feat_out,), jnp.float32)
    # kaiming_normal_(fc.weight, mode='fan_out'): fan_out = num_classes, gain=sqrt(2)
    fc_std = jnp.sqrt(2.0 / num_classes)
    w_fc = fc_std * jax.random.normal(k_fc, (num_classes, feat_out), jnp.float32)
    return w_conv, bn_gamma, bn_beta, w_fc


def _reference(x_nchw, w_conv, bn_gamma, bn_beta, w_fc):
    N, Cin = x_nchw.shape[0], x_nchw.shape[1]
    Cout = w_conv.shape[0]
    x2d = x_nchw.reshape(N, Cin)
    y = x2d @ w_conv.reshape(Cout, Cin).T
    mu = jnp.mean(y, axis=0, keepdims=True)
    var = jnp.mean((y - mu) ** 2, axis=0, keepdims=True)
    reduce = (y - mu) / jnp.sqrt(var + BN_EPS) * bn_gamma[None, :] + bn_beta[None, :]
    fc = reduce @ w_fc.T
    return reduce, fc


if __name__ == "__main__":
    N, feat_in, feat_out, num_classes = 8, 32, 16, 8
    key = jax.random.PRNGKey(0)
    k_x, k_p = jax.random.split(key)
    x = jax.random.normal(k_x, (N, feat_in, 1, 1), jnp.float32)
    w_conv, bn_gamma, bn_beta, w_fc = init_params(k_p, feat_in, feat_out, num_classes)

    prepared, dims = prepare_params(w_conv, bn_gamma, bn_beta, w_fc)
    reduce, fc = reduction_fc_forward(x, prepared, dims)
    jax.block_until_ready((reduce, fc))

    ref_reduce, ref_fc = _reference(x, w_conv, bn_gamma, bn_beta, w_fc)
    assert reduce.shape == (N, feat_out) and fc.shape == (N, num_classes)
    # bf16 MXU operands with f32 accumulation -> compare against the f32 reference
    # with bf16-level tolerance.
    assert jnp.allclose(reduce, ref_reduce, atol=5e-2, rtol=5e-2)
    assert jnp.allclose(fc, ref_fc, atol=5e-2, rtol=5e-2)
    print("KERNEL_OK")
</pallas_src>

<mosaic_0001>
module attributes {stable_mosaic.version = 11 : i64} {
  func.func @kernel(%arg0: i32, %arg1: memref<16x128xbf16, #tpu.memory_space<vmem>>, %arg2: memref<128x128xbf16, #tpu.memory_space<vmem>>, %arg3: memref<1x128xf32, #tpu.memory_space<vmem>>, %arg4: memref<1x128xf32, #tpu.memory_space<vmem>>, %arg5: memref<16x128xf32, #tpu.memory_space<vmem>>, %arg6: memref<16x128xbf16, #tpu.memory_space<vmem>>) attributes {dimension_semantics = [#tpu.dimension_semantics<arbitrary>], iteration_bounds = array<i64: 1>, scalar_prefetch = 0 : i64, scratch_operands = 0 : i64, tpu.core_type = #tpu.core_type<tc>, window_params = [{pipeline_mode = #tpu.pipeline_mode<synchronous>, transform_indices = @transform_0, window_bounds = array<i64: 16, 128>}, {pipeline_mode = #tpu.pipeline_mode<synchronous>, transform_indices = @transform_1, window_bounds = array<i64: 128, 128>}, {pipeline_mode = #tpu.pipeline_mode<synchronous>, transform_indices = @transform_2, window_bounds = array<i64: 1, 128>}, {pipeline_mode = #tpu.pipeline_mode<synchronous>, transform_indices = @transform_3, window_bounds = array<i64: 1, 128>}, {pipeline_mode = #tpu.pipeline_mode<synchronous>, transform_indices = @transform_4, window_bounds = array<i64: 16, 128>}, {pipeline_mode = #tpu.pipeline_mode<synchronous>, transform_indices = @transform_5, window_bounds = array<i64: 16, 128>}]} {
    %c0 = arith.constant 0 : index
    %c0_0 = arith.constant 0 : index
    %0 = vector.load %arg1[%c0, %c0_0] : memref<16x128xbf16, #tpu.memory_space<vmem>>, vector<16x128xbf16>
    %c0_1 = arith.constant 0 : index
    %c0_2 = arith.constant 0 : index
    %1 = vector.load %arg2[%c0_1, %c0_2] : memref<128x128xbf16, #tpu.memory_space<vmem>>, vector<128x128xbf16>
    %cst = arith.constant dense<0.000000e+00> : vector<16x128xf32>
    %2 = tpu.matmul %0, %1, %cst {dimension_numbers = #tpu.dot_dimension_numbers<[1], [0], [0], [1], [0, 0, 1, 1], [], []>} : vector<16x128xbf16>, vector<128x128xbf16>, vector<16x128xf32> -> vector<16x128xf32>
    %cst_3 = arith.constant dense<0.000000e+00> : vector<128xf32>
    %3 = vector.multi_reduction <add>, %2, %cst_3 [0] : vector<16x128xf32> to vector<128xf32>
    %4 = vector.shape_cast %3 : vector<128xf32> to vector<1x128xf32>
    %cst_4 = arith.constant 1.250000e-01 : f32
    %5 = vector.broadcast %cst_4 : f32 to vector<1x128xf32>
    %6 = arith.mulf %4, %5 : vector<1x128xf32>
    %7 = arith.mulf %2, %2 : vector<16x128xf32>
    %cst_5 = arith.constant dense<0.000000e+00> : vector<128xf32>
    %8 = vector.multi_reduction <add>, %7, %cst_5 [0] : vector<16x128xf32> to vector<128xf32>
    %9 = vector.shape_cast %8 : vector<128xf32> to vector<1x128xf32>
    %cst_6 = arith.constant 1.250000e-01 : f32
    %10 = vector.broadcast %cst_6 : f32 to vector<1x128xf32>
    %11 = arith.mulf %9, %10 : vector<1x128xf32>
    %12 = arith.mulf %6, %6 : vector<1x128xf32>
    %13 = arith.subf %11, %12 : vector<1x128xf32>
    %cst_7 = arith.constant 0.000000e+00 : f32
    %14 = vector.broadcast %cst_7 : f32 to vector<1x128xf32>
    %15 = arith.maximumf %13, %14 : vector<1x128xf32>
    %c0_8 = arith.constant 0 : index
    %c0_9 = arith.constant 0 : index
    %16 = vector.load %arg3[%c0_8, %c0_9] : memref<1x128xf32, #tpu.memory_space<vmem>>, vector<1x128xf32>
    %cst_10 = arith.constant 9.99999974E-6 : f32
    %17 = vector.broadcast %cst_10 : f32 to vector<1x128xf32>
    %18 = arith.addf %15, %17 : vector<1x128xf32>
    %19 = math.rsqrt %18 : vector<1x128xf32>
    %20 = arith.mulf %16, %19 : vector<1x128xf32>
    %c0_11 = arith.constant 0 : index
    %c0_12 = arith.constant 0 : index
    %21 = vector.load %arg4[%c0_11, %c0_12] : memref<1x128xf32, #tpu.memory_space<vmem>>, vector<1x128xf32>
    %22 = arith.mulf %6, %20 : vector<1x128xf32>
    %23 = arith.subf %21, %22 : vector<1x128xf32>
    %24 = vector.broadcast %20 : vector<1x128xf32> to vector<16x128xf32>
    %25 = arith.mulf %2, %24 : vector<16x128xf32>
    %26 = vector.broadcast %23 : vector<1x128xf32> to vector<16x128xf32>
    %27 = arith.addf %25, %26 : vector<16x128xf32>
    %c0_13 = arith.constant 0 : index
    %c0_14 = arith.constant 0 : index
    %28 = vector.load %arg5[%c0_13, %c0_14] : memref<16x128xf32, #tpu.memory_space<vmem>>, vector<16x128xf32>
    tpu.vector_store %arg5[%c0_13, %c0_14], %27 {strides = array<i32>} : memref<16x128xf32, #tpu.memory_space<vmem>>, vector<16x128xf32>,
    %29 = arith.truncf %27 : vector<16x128xf32> to vector<16x128xbf16>
    %c0_15 = arith.constant 0 : index
    %c0_16 = arith.constant 0 : index
    %30 = vector.load %arg6[%c0_15, %c0_16] : memref<16x128xbf16, #tpu.memory_space<vmem>>, vector<16x128xbf16>
    tpu.vector_store %arg6[%c0_15, %c0_16], %29 {strides = array<i32>} : memref<16x128xbf16, #tpu.memory_space<vmem>>, vector<16x128xbf16>,
    return
  }
  func.func @transform_0(%arg0: i32) -> (i32, i32) {
    %c0_i32 = arith.constant 0 : i32
    %c0_i32_0 = arith.constant 0 : i32
    %c0_i32_1 = arith.constant 0 : i32
    return %c0_i32, %c0_i32_0 : i32, i32
  }
  func.func @transform_1(%arg0: i32) -> (i32, i32) {
    %c0_i32 = arith.constant 0 : i32
    %c0_i32_0 = arith.constant 0 : i32
    %c0_i32_1 = arith.constant 0 : i32
    return %c0_i32, %c0_i32_0 : i32, i32
  }
  func.func @transform_2(%arg0: i32) -> (i32, i32) {
    %c0_i32 = arith.constant 0 : i32
    %c0_i32_0 = arith.constant 0 : i32
    %c0_i32_1 = arith.constant 0 : i32
    return %c0_i32, %c0_i32_0 : i32, i32
  }
  func.func @transform_3(%arg0: i32) -> (i32, i32) {
    %c0_i32 = arith.constant 0 : i32
    %c0_i32_0 = arith.constant 0 : i32
    %c0_i32_1 = arith.constant 0 : i32
    return %c0_i32, %c0_i32_0 : i32, i32
  }
  func.func @transform_4(%arg0: i32) -> (i32, i32) {
    %c0_i32 = arith.constant 0 : i32
    %c0_i32_0 = arith.constant 0 : i32
    %c0_i32_1 = arith.constant 0 : i32
    return %c0_i32, %c0_i32_0 : i32, i32
  }
  func.func @transform_5(%arg0: i32) -> (i32, i32) {
    %c0_i32 = arith.constant 0 : i32
    %c0_i32_0 = arith.constant 0 : i32
    %c0_i32_1 = arith.constant 0 : i32
    return %c0_i32, %c0_i32_0 : i32, i32
  }
}

module attributes {stable_mosaic.version = 11 : i64} {
  func.func @kernel(%arg0: i32, %arg1: memref<16x128xbf16, #tpu.memory_space<vmem>>, %arg2: memref<128x128xbf16, #tpu.memory_space<vmem>>, %arg3: memref<1x128xf32, #tpu.memory_space<vmem>>, %arg4: memref<1x128xf32, #tpu.memory_space<vmem>>, %arg5: memref<16x128xf32, #tpu.memory_space<vmem>>, %arg6: memref<16x128xbf16, #tpu.memory_space<vmem>>) attributes {dimension_semantics = [#tpu.dimension_semantics<arbitrary>], iteration_bounds = array<i64: 1>, scalar_prefetch = 0 : i64, scratch_operands = 0 : i64, tpu.core_type = #tpu.core_type<tc>, window_params = [{pipeline_mode = #tpu.pipeline_mode<synchronous>, transform_indices = @transform_0, window_bounds = array<i64: 16, 128>}, {pipeline_mode = #tpu.pipeline_mode<synchronous>, transform_indices = @transform_1, window_bounds = array<i64: 128, 128>}, {pipeline_mode = #tpu.pipeline_mode<synchronous>, transform_indices = @transform_2, window_bounds = array<i64: 1, 128>}, {pipeline_mode = #tpu.pipeline_mode<synchronous>, transform_indices = @transform_3, window_bounds = array<i64: 1, 128>}, {pipeline_mode = #tpu.pipeline_mode<synchronous>, transform_indices = @transform_4, window_bounds = array<i64: 16, 128>}, {pipeline_mode = #tpu.pipeline_mode<synchronous>, transform_indices = @transform_5, window_bounds = array<i64: 16, 128>}]} {
    %c0 = arith.constant 0 : index
    %c0_0 = arith.constant 0 : index
    %0 = vector.load %arg1[%c0, %c0_0] : memref<16x128xbf16, #tpu.memory_space<vmem>>, vector<16x128xbf16>
    %c0_1 = arith.constant 0 : index
    %c0_2 = arith.constant 0 : index
    %1 = vector.load %arg2[%c0_1, %c0_2] : memref<128x128xbf16, #tpu.memory_space<vmem>>, vector<128x128xbf16>
    %cst = arith.constant dense<0.000000e+00> : vector<16x128xf32>
    %2 = tpu.matmul %0, %1, %cst {dimension_numbers = #tpu.dot_dimension_numbers<[1], [0], [0], [1], [0, 0, 1, 1], [], []>} : vector<16x128xbf16>, vector<128x128xbf16>, vector<16x128xf32> -> vector<16x128xf32>
    %cst_3 = arith.constant dense<0.000000e+00> : vector<128xf32>
    %3 = vector.multi_reduction <add>, %2, %cst_3 [0] : vector<16x128xf32> to vector<128xf32>
    %4 = vector.shape_cast %3 : vector<128xf32> to vector<1x128xf32>
    %cst_4 = arith.constant 1.250000e-01 : f32
    %5 = vector.broadcast %cst_4 : f32 to vector<1x128xf32>
    %6 = arith.mulf %4, %5 : vector<1x128xf32>
    %7 = arith.mulf %2, %2 : vector<16x128xf32>
    %cst_5 = arith.constant dense<0.000000e+00> : vector<128xf32>
    %8 = vector.multi_reduction <add>, %7, %cst_5 [0] : vector<16x128xf32> to vector<128xf32>
    %9 = vector.shape_cast %8 : vector<128xf32> to vector<1x128xf32>
    %cst_6 = arith.constant 1.250000e-01 : f32
    %10 = vector.broadcast %cst_6 : f32 to vector<1x128xf32>
    %11 = arith.mulf %9, %10 : vector<1x128xf32>
    %12 = arith.mulf %6, %6 : vector<1x128xf32>
    %13 = arith.subf %11, %12 : vector<1x128xf32>
    %cst_7 = arith.constant 0.000000e+00 : f32
    %14 = vector.broadcast %cst_7 : f32 to vector<1x128xf32>
    %15 = arith.maximumf %13, %14 : vector<1x128xf32>
    %c0_8 = arith.constant 0 : index
    %c0_9 = arith.constant 0 : index
    %16 = vector.load %arg3[%c0_8, %c0_9] : memref<1x128xf32, #tpu.memory_space<vmem>>, vector<1x128xf32>
    %cst_10 = arith.constant 9.99999974E-6 : f32
    %17 = vector.broadcast %cst_10 : f32 to vector<1x128xf32>
    %18 = arith.addf %15, %17 : vector<1x128xf32>
    %19 = math.rsqrt %18 : vector<1x128xf32>
    %20 = arith.mulf %16, %19 : vector<1x128xf32>
    %c0_11 = arith.constant 0 : index
    %c0_12 = arith.constant 0 : index
    %21 = vector.load %arg4[%c0_11, %c0_12] : memref<1x128xf32, #tpu.memory_space<vmem>>, vector<1x128xf32>
    %22 = arith.mulf %6, %20 : vector<1x128xf32>
    %23 = arith.subf %21, %22 : vector<1x128xf32>
    %24 = vector.broadcast %20 : vector<1x128xf32> to vector<16x128xf32>
    %25 = arith.mulf %2, %24 : vector<16x128xf32>
    %26 = vector.broadcast %23 : vector<1x128xf32> to vector<16x128xf32>
    %27 = arith.addf %25, %26 : vector<16x128xf32>
    %c0_13 = arith.constant 0 : index
    %c0_14 = arith.constant 0 : index
    %28 = vector.load %arg5[%c0_13, %c0_14] : memref<16x128xf32, #tpu.memory_space<vmem>>, vector<16x128xf32>
    tpu.vector_store %arg5[%c0_13, %c0_14], %27 {strides = array<i32>} : memref<16x128xf32, #tpu.memory_space<vmem>>, vector<16x128xf32>,
    %29 = arith.truncf %27 : vector<16x128xf32> to vector<16x128xbf16>
    %c0_15 = arith.constant 0 : index
    %c0_16 = arith.constant 0 : index
    %30 = vector.load %arg6[%c0_15, %c0_16] : memref<16x128xbf16, #tpu.memory_space<vmem>>, vector<16x128xbf16>
    tpu.vector_store %arg6[%c0_15, %c0_16], %29 {strides = array<i32>} : memref<16x128xbf16, #tpu.memory_space<vmem>>, vector<16x128xbf16>,
    return
  }
  func.func @transform_0(%arg0: i32) -> (i32, i32) {
    %c0_i32 = arith.constant 0 : i32
    %c0_i32_0 = arith.constant 0 : i32
    %c0_i32_1 = arith.constant 0 : i32
    return %c0_i32, %c0_i32_0 : i32, i32
  }
  func.func @transform_1(%arg0: i32) -> (i32, i32) {
    %c0_i32 = arith.constant 0 : i32
    %c0_i32_0 = arith.constant 0 : i32
    %c0_i32_1 = arith.constant 0 : i32
    return %c0_i32, %c0_i32_0 : i32, i32
  }
  func.func @transform_2(%arg0: i32) -> (i32, i32) {
    %c0_i32 = arith.constant 0 : i32
    %c0_i32_0 = arith.constant 0 : i32
    %c0_i32_1 = arith.constant 0 : i32
    return %c0_i32, %c0_i32_0 : i32, i32
  }
  func.func @transform_3(%arg0: i32) -> (i32, i32) {
    %c0_i32 = arith.constant 0 : i32
    %c0_i32_0 = arith.constant 0 : i32
    %c0_i32_1 = arith.constant 0 : i32
    return %c0_i32, %c0_i32_0 : i32, i32
  }
  func.func @transform_4(%arg0: i32) -> (i32, i32) {
    %c0_i32 = arith.constant 0 : i32
    %c0_i32_0 = arith.constant 0 : i32
    %c0_i32_1 = arith.constant 0 : i32
    return %c0_i32, %c0_i32_0 : i32, i32
  }
  func.func @transform_5(%arg0: i32) -> (i32, i32) {
    %c0_i32 = arith.constant 0 : i32
    %c0_i32_0 = arith.constant 0 : i32
    %c0_i32_1 = arith.constant 0 : i32
    return %c0_i32, %c0_i32_0 : i32, i32
  }
}

</mosaic_0001>

<bundles_post_ra>
// kernel: tpu_custom_call.1
= control target key start
LH: loop header
LB: loop body
LE: loop exit
PB: predicated region body
PF: predicated region fallthrough
CT: control target
= control target key end

     0   :  { %11 = vsyncpa [#allocation3], 0  ;;  %s527_s0 = inlined_call_operand.hbm [shape: bf16[16,128], index: 0, kind: input, shape index: {}]   ;;  %s528_s1 = inlined_call_operand.hbm [shape: bf16[128,128], index: 1, kind: input, shape index: {}]   ;;  %s529_s2 = inlined_call_operand.vmem [shape: f32[1,128], index: 2, kind: input, shape index: {}]   ;;  %s530_s3 = inlined_call_operand.vmem [shape: f32[1,128], index: 3, kind: input, shape index: {}]   ;;  %s531_s4 = inlined_call_operand.hbm [shape: f32[16,128], index: 4, kind: output, shape index: {0}]   ;;  %s532_s5 = inlined_call_operand.hbm [shape: bf16[16,128], index: 5, kind: output, shape index: {1}]  }
   0x1   :  { %12 = vsyncpa [#allocation6], 0 }
   0x2   :  { %13 = vsyncpa [#allocation4], 0 }
   0x3   :  { %14 = vsyncpa [#allocation9], 0  ;;  %s417_s18 = smov [#allocation2]   ;;  %s321_s22 = scalar_lea.hbm %s527_s0, 128 }
   0x4   :  { %s20_s19 = sshll.u32 %s417_s18, 4  ;;  %p322_p0 = scmp.ne.s32.totalorder %s527_s0, %s321_s22  ;;  %s21_s19 = int_to_ptr.vmem [resolvable:$true] %s20_s19 }
   0x5   :  { %p325_p1 = scmp.lt.u32.totalorder %s321_s22, %s527_s0 }
   0x7   :  { %p327_p2 = pnand %p325_p1, %p322_p0 }
   0x9   :  { %330 = shalt.err (!%p327_p2)
}
   0xa   :  { %s331_s27 = scalar_lea.vmem %s21_s19, 128  ;;  %p336_p4 = scmp.lt.s32.totalorder %s21_s19, %s21_s19 }
   0xb   :  { %p332_p3 = scmp.ne.s32.totalorder %s21_s19, %s331_s27  ;;  %p337_p5 = scmp.lt.s32.totalorder %s331_s27, %s331_s27 }
   0xd   :  { %p338_p6 = por %p337_p5, %p336_p4 }
   0xf   :  { %p339_p7 = pnand %p338_p6, %p332_p3 }
  0x11   :  { %342 = shalt.err (!%p339_p7)
}
  0x12   :  { %s418_s28 = smov 64   ;;  %s419_s29 = smov 4  }
  0x13   :  { %26 = dma.hbm_to_vmem [thread:$0]  %s527_s0, 128, %s21_s19, [#allocation3], %s418_s28, %s418_s28, %s419_s29  }
  0x14   :  { %s420_s7 = smov [#allocation5]   ;;  %s343_s11 = scalar_lea.hbm %s528_s1, 1024 }
  0x15   :  { %s32_s8 = sshll.u32 %s420_s7, 4  ;;  %p344_p8 = scmp.ne.s32.totalorder %s528_s1, %s343_s11  ;;  %s33_s8 = int_to_ptr.vmem [resolvable:$true] %s32_s8 }
  0x16   :  { %p347_p9 = scmp.lt.u32.totalorder %s343_s11, %s528_s1 }
  0x18   :  { %p349_p10 = pnand %p347_p9, %p344_p8 }
  0x1a   :  { %352 = shalt.err (!%p349_p10)
}
  0x1b   :  { %s353_s16 = scalar_lea.vmem %s33_s8, 1024  ;;  %p358_p12 = scmp.lt.s32.totalorder %s33_s8, %s33_s8 }
  0x1c   :  { %p354_p11 = scmp.ne.s32.totalorder %s33_s8, %s353_s16  ;;  %p359_p13 = scmp.lt.s32.totalorder %s353_s16, %s353_s16 }
  0x1e   :  { %p360_p0 = por %p359_p13, %p358_p12 }
  0x20   :  { %p361_p1 = pnand %p360_p0, %p354_p11 }
  0x22   :  { %364 = shalt.err (!%p361_p1)
}
  0x23   :  { %38 = dma.hbm_to_vmem [thread:$0]  %s528_s1, 1024, %s33_s8, [#allocation6], %s418_s28, %s418_s28, %s419_s29  }
  0x24   :  { %409 = dma.done.wait [#allocation3], 128  }
  0x25   :  { %410 = vsyncadd [#allocation3], 4294967168 }
  0x26   :  { %411 = dma.done.wait [#allocation6], 1024  }
  0x27   :  { %412 = vsyncadd [#allocation6], 4294966272  ;;  %v421_v0 = vmov 0.0   ;;  %vm422_vm0 = vmmov 0   ;;  %v310_v1 = vld [vmem:[#allocation5] sm:$0xff]   ;;  %v311_v2 = vld [vmem:[#allocation5 + $0x8] sm:$0xff]   ;;  %v192_v36 = vlaneseq }
  0x28   :  { %280 = vmatprep.subr.bf16.mxu0 %v421_v0  ;;  %296 = vmatprep.mubr.msk.bf16.mxu0 %vm422_vm0, %v421_v0  ;;  %v312_v3 = vld [vmem:[#allocation5 + $0x10] sm:$0xff]   ;;  %v313_v4 = vld [vmem:[#allocation5 + $0x18] sm:$0xff]   ;;  %v314_v5 = vld [vmem:[#allocation5 + $0x20] sm:$0xff]   ;;  %s423_s21 = smov [#allocation7]   ;;  %s424_s23 = smov [#allocation8]  }
  0x29   :  { %281 = vmatpush3.bf16.msra.mxu0 %v310_v1  ;;  %v315_v6 = vld [vmem:[#allocation5 + $0x28] sm:$0xff]   ;;  %v316_v7 = vld [vmem:[#allocation5 + $0x30] sm:$0xff]   ;;  %v317_v8 = vld [vmem:[#allocation5 + $0x38] sm:$0xff]   ;;  %v193_v37 = vshrl.u32 %v192_v36, 7  ;;  %s224_s22 = sshll.u32 %s423_s21, 4  ;;  %s236_s24 = sshll.u32 %s424_s23, 4  ;;  %s225_s22 = int_to_ptr.vmem [resolvable:$true] %s224_s22  ;;  %s493_s24 = int_to_ptr.vmem [resolvable:$true] %s236_s24 }
  0x2a   :  { %282 = vmatprep.subr.bf16.mxu0 %v421_v0  ;;  %v318_v9 = vld [vmem:[#allocation2] sm:$0xff]   ;;  %p370_p3 = scmp.lt.s32.totalorder %s225_s22, %s225_s22 }
  0x2b   :  { %v184_v38 = vld [vmem:[%s529_s2] sm:$0x1]  ;;  %v194_v39 = vsub.s32 0, %v193_v37  ;;  %s365_s2 = scalar_lea.vmem %s225_s22, 256 }
  0x2c   :  { %v188_v42 = vld [vmem:[%s530_s3] sm:$0x1]  ;;  %p366_p2 = scmp.ne.s32.totalorder %s225_s22, %s365_s2  ;;  %p371_p4 = scmp.lt.s32.totalorder %s365_s2, %s365_s2 }
  0x2d   :  { %283 = vmatpush3.bf16.msra.mxu0 %v311_v2 }
  0x2e   :  { %284 = vmatprep.subr.bf16.mxu0 %v421_v0  ;;  %p372_p5 = por %p371_p4, %p370_p3 }
  0x30   :  { %p373_p6 = pnand %p372_p5, %p366_p2 }
  0x31   :  { %285 = vmatpush3.bf16.msra.mxu0 %v312_v3 }
  0x32   :  { %286 = vmatprep.subr.bf16.mxu0 %v421_v0 }
  0x35   :  { %287 = vmatpush3.bf16.msra.mxu0 %v313_v4 }
  0x36   :  { %288 = vmatprep.subr.bf16.mxu0 %v421_v0 }
  0x39   :  { %289 = vmatpush3.bf16.msra.mxu0 %v314_v5 }
  0x3a   :  { %290 = vmatprep.subr.bf16.mxu0 %v421_v0 }
  0x3d   :  { %291 = vmatpush3.bf16.msra.mxu0 %v315_v6 }
  0x3e   :  { %292 = vmatprep.subr.bf16.mxu0 %v421_v0 }
  0x41   :  { %293 = vmatpush3.bf16.msra.mxu0 %v316_v7 }
  0x42   :  { %294 = vmatprep.subr.bf16.mxu0 %v421_v0 }
  0x45   :  { %295 = vmatpush3.bf16.msra.mxu0 %v317_v8 }
  0x48   :  { %297 = vmatmul.mubr.bf16.vlgmr.msra.gmra.mrb[0].mxu0 %v318_v9 }
 0x11b   :  { %v156_v10 = vpop.f32.mrb[0].mxu0 }
 0x11c   :  { %v298_v11 = vpop.f32.mrb[1].mxu0  ;;  %v171_v13 = vmul.f32 %v156_v10, %v156_v10 }
 0x11d   :  { %v159_v12 = vpop.f32.mrb[2].mxu0 }
 0x11e   :  { %v163_v14 = vadd.f32 %v159_v12, %v156_v10  ;;  %v172_v15 = vmul.f32 %v159_v12, %v159_v12  ;;  %v299_v16 = vpop.f32.mrb[3].mxu0 }
 0x120   :  { %v164_v17 = vrot.slane %v163_v14, 4  ;;  %v173_v18 = vadd.f32 %v172_v15, %v171_v13 }
 0x122   :  { %v165_v19 = vadd.f32 %v164_v17, %v163_v14  ;;  %v174_v20 = vrot.slane %v173_v18, 4 }
 0x124   :  { %v166_v21 = vrot.slane %v165_v19, 2  ;;  %v175_v22 = vadd.f32 %v174_v20, %v173_v18 }
 0x126   :  { %v167_v23 = vadd.f32 %v166_v21, %v165_v19  ;;  %v176_v24 = vrot.slane %v175_v22, 2 }
 0x128   :  { %v168_v25 = vrot.slane %v167_v23, 1  ;;  %v177_v26 = vadd.f32 %v176_v24, %v175_v22 }
 0x12a   :  { %v169_v27 = vadd.f32 %v168_v25, %v167_v23  ;;  %v178_v28 = vrot.slane %v177_v26, 1 }
 0x12c   :  { %v170_v29 = vmul.f32 0.125, %v169_v27  ;;  %v179_v30 = vadd.f32 %v178_v28, %v177_v26 }
 0x12e   :  { %v180_v31 = vmul.f32 0.125, %v179_v30  ;;  %v181_v32 = vmul.f32 %v170_v29, %v170_v29 }
 0x130   :  { %v182_v33 = vsub.f32 %v180_v31, %v181_v32 }
 0x132   :  { %v183_v34 = vmax.f32 %v182_v33, 0.0 }
 0x134   :  { %v185_v35 = vadd.f32 1e-05, %v183_v34 }
 0x136   :  { %319 = vrsqrt.f32 %v185_v35 }
 0x140   :  { %v320_v40 = vpop.eup %319 }
 0x141   :  { %v187_v41 = vmul.f32 %v320_v40, %v184_v38 }
 0x143   :  { %v189_v43 = vmul.f32 %v187_v41, %v170_v29  ;;  %v195_v44 = vrot.slane %v187_v41, %v194_v39 }
 0x145   :  { %v190_v45 = vsub.f32 %v188_v42, %v189_v43  ;;  %v197_v46 = vmul.f32 %v195_v44, %v156_v10  ;;  %v198_v47 = vmul.f32 %v195_v44, %v159_v12 }
 0x147   :  { %v203_v48 = vrot.slane %v190_v45, %v194_v39 }
 0x149   :  { %v205_v49 = vadd.f32 %v203_v48, %v197_v46  ;;  %v206_v50 = vadd.f32 %v203_v48, %v198_v47 }
 0x14b   :  { %208 = vst [vmem:[#allocation7 + $0x8] sm:$0xff] %v206_v50  ;;  %207 = vst [vmem:[#allocation7] sm:$0xff] %v205_v49  ;;  %v269_v51 = vpack.c.bf16 %v206_v50, %v205_v49 }
 0x14c   :  { %376 = shalt.err (!%p373_p6)
}
 0x14d   :  { %s377_s26 = scalar_lea.hbm %s531_s4, 256 }
 0x14e   :  { %p378_p7 = scmp.ne.s32.totalorder %s531_s4, %s377_s26  ;;  %p381_p8 = scmp.lt.u32.totalorder %s377_s26, %s531_s4 }
 0x150   :  { %p383_p9 = pnand %p381_p8, %p378_p7 }
 0x152   :  { %386 = shalt.err (!%p383_p9)
}
 0x153   :  { %s425_s8 = smov 128   ;;  %s426_s9 = smov 8   ;;  %270 = vst [vmem:[#allocation8] sm:$0xff] %v269_v51  }
 0x154   :  { %230 = dma.vmem_to_hbm [thread:$0]  %s225_s22, 256, %s531_s4, [#allocation4], %s425_s8, %s425_s8, %s426_s9  }
 0x155   :  { %s387_s12 = scalar_lea.vmem %s493_s24, 128  ;;  %p392_p11 = scmp.lt.s32.totalorder %s493_s24, %s493_s24 }
 0x156   :  { %p388_p10 = scmp.ne.s32.totalorder %s493_s24, %s387_s12  ;;  %p393_p12 = scmp.lt.s32.totalorder %s387_s12, %s387_s12 }
 0x158   :  { %p394_p13 = por %p393_p12, %p392_p11 }
 0x15a   :  { %p395_p0 = pnand %p394_p13, %p388_p10 }
 0x15c   :  { %398 = shalt.err (!%p395_p0)
}
 0x15d   :  { %s399_s15 = scalar_lea.hbm %s532_s5, 128 }
 0x15e   :  { %p400_p1 = scmp.ne.s32.totalorder %s532_s5, %s399_s15  ;;  %p403_p2 = scmp.lt.u32.totalorder %s399_s15, %s532_s5 }
 0x160   :  { %p405_p3 = pnand %p403_p2, %p400_p1 }
 0x162   :  { %408 = shalt.err (!%p405_p3)
}
 0x163   :  { %242 = dma.vmem_to_hbm [thread:$0]  %s493_s24, 128, %s532_s5, [#allocation9], %s418_s28, %s418_s28, %s419_s29  }
 0x164   :  { %413 = dma.done.wait [#allocation4], 256  }
 0x165   :  { %414 = vsyncadd [#allocation4], 4294967040 }
 0x166   :  { %415 = dma.done.wait [#allocation9], 128  }
 0x167   :  { %416 = vsyncadd [#allocation9], 4294967168 }
 0x168   :  { %249 = vsyncpa [#allocation3], 1 }
 0x169   :  { %250 = vsyncpa [#allocation6], 1 }
 0x16a   :  { %251 = vsyncpa [#allocation4], 1 }
 0x16b   :  { %252 = vsyncpa [#allocation9], 1 }

// kernel: tpu_custom_call.1
= control target key start
LH: loop header
LB: loop body
LE: loop exit
PB: predicated region body
PF: predicated region fallthrough
CT: control target
= control target key end

     0   :  { %11 = vsyncpa [#allocation3], 0  ;;  %s527_s0 = inlined_call_operand.hbm [shape: bf16[16,128], index: 0, kind: input, shape index: {}]   ;;  %s528_s1 = inlined_call_operand.hbm [shape: bf16[128,128], index: 1, kind: input, shape index: {}]   ;;  %s529_s2 = inlined_call_operand.vmem [shape: f32[1,128], index: 2, kind: input, shape index: {}]   ;;  %s530_s3 = inlined_call_operand.vmem [shape: f32[1,128], index: 3, kind: input, shape index: {}]   ;;  %s531_s4 = inlined_call_operand.hbm [shape: f32[16,128], index: 4, kind: output, shape index: {0}]   ;;  %s532_s5 = inlined_call_operand.hbm [shape: bf16[16,128], index: 5, kind: output, shape index: {1}]  }
   0x1   :  { %12 = vsyncpa [#allocation6], 0 }
   0x2   :  { %13 = vsyncpa [#allocation4], 0 }
   0x3   :  { %14 = vsyncpa [#allocation9], 0  ;;  %s417_s18 = smov [#allocation2]   ;;  %s321_s22 = scalar_lea.hbm %s527_s0, 128 }
   0x4   :  { %s20_s19 = sshll.u32 %s417_s18, 4  ;;  %p322_p0 = scmp.ne.s32.totalorder %s527_s0, %s321_s22  ;;  %s21_s19 = int_to_ptr.vmem [resolvable:$true] %s20_s19 }
   0x5   :  { %p325_p1 = scmp.lt.u32.totalorder %s321_s22, %s527_s0 }
   0x7   :  { %p327_p2 = pnand %p325_p1, %p322_p0 }
   0x9   :  { %330 = shalt.err (!%p327_p2)
}
   0xa   :  { %s331_s27 = scalar_lea.vmem %s21_s19, 128  ;;  %p336_p4 = scmp.lt.s32.totalorder %s21_s19, %s21_s19 }
   0xb   :  { %p332_p3 = scmp.ne.s32.totalorder %s21_s19, %s331_s27  ;;  %p337_p5 = scmp.lt.s32.totalorder %s331_s27, %s331_s27 }
   0xd   :  { %p338_p6 = por %p337_p5, %p336_p4 }
   0xf   :  { %p339_p7 = pnand %p338_p6, %p332_p3 }
  0x11   :  { %342 = shalt.err (!%p339_p7)
}
  0x12   :  { %s418_s28 = smov 64   ;;  %s419_s29 = smov 4  }
  0x13   :  { %26 = dma.hbm_to_vmem [thread:$0]  %s527_s0, 128, %s21_s19, [#allocation3], %s418_s28, %s418_s28, %s419_s29  }
  0x14   :  { %s420_s7 = smov [#allocation5]   ;;  %s343_s11 = scalar_lea.hbm %s528_s1, 1024 }
  0x15   :  { %s32_s8 = sshll.u32 %s420_s7, 4  ;;  %p344_p8 = scmp.ne.s32.totalorder %s528_s1, %s343_s11  ;;  %s33_s8 = int_to_ptr.vmem [resolvable:$true] %s32_s8 }
  0x16   :  { %p347_p9 = scmp.lt.u32.totalorder %s343_s11, %s528_s1 }
  0x18   :  { %p349_p10 = pnand %p347_p9, %p344_p8 }
  0x1a   :  { %352 = shalt.err (!%p349_p10)
}
  0x1b   :  { %s353_s16 = scalar_lea.vmem %s33_s8, 1024  ;;  %p358_p12 = scmp.lt.s32.totalorder %s33_s8, %s33_s8 }
  0x1c   :  { %p354_p11 = scmp.ne.s32.totalorder %s33_s8, %s353_s16  ;;  %p359_p13 = scmp.lt.s32.totalorder %s353_s16, %s353_s16 }
  0x1e   :  { %p360_p0 = por %p359_p13, %p358_p12 }
  0x20   :  { %p361_p1 = pnand %p360_p0, %p354_p11 }
  0x22   :  { %364 = shalt.err (!%p361_p1)
}
  0x23   :  { %38 = dma.hbm_to_vmem [thread:$0]  %s528_s1, 1024, %s33_s8, [#allocation6], %s418_s28, %s418_s28, %s419_s29  }
  0x24   :  { %409 = dma.done.wait [#allocation3], 128  }
  0x25   :  { %410 = vsyncadd [#allocation3], 4294967168 }
  0x26   :  { %411 = dma.done.wait [#allocation6], 1024  }
  0x27   :  { %412 = vsyncadd [#allocation6], 4294966272  ;;  %v421_v0 = vmov 0.0   ;;  %vm422_vm0 = vmmov 0   ;;  %v310_v1 = vld [vmem:[#allocation5] sm:$0xff]   ;;  %v311_v2 = vld [vmem:[#allocation5 + $0x8] sm:$0xff]   ;;  %v192_v36 = vlaneseq }
  0x28   :  { %280 = vmatprep.subr.bf16.mxu0 %v421_v0  ;;  %296 = vmatprep.mubr.msk.bf16.mxu0 %vm422_vm0, %v421_v0  ;;  %v312_v3 = vld [vmem:[#allocation5 + $0x10] sm:$0xff]   ;;  %v313_v4 = vld [vmem:[#allocation5 + $0x18] sm:$0xff]   ;;  %v314_v5 = vld [vmem:[#allocation5 + $0x20] sm:$0xff]   ;;  %s423_s21 = smov [#allocation7]   ;;  %s424_s23 = smov [#allocation8]  }
  0x29   :  { %281 = vmatpush3.bf16.msra.mxu0 %v310_v1  ;;  %v315_v6 = vld [vmem:[#allocation5 + $0x28] sm:$0xff]   ;;  %v316_v7 = vld [vmem:[#allocation5 + $0x30] sm:$0xff]   ;;  %v317_v8 = vld [vmem:[#allocation5 + $0x38] sm:$0xff]   ;;  %v193_v37 = vshrl.u32 %v192_v36, 7  ;;  %s224_s22 = sshll.u32 %s423_s21, 4  ;;  %s236_s24 = sshll.u32 %s424_s23, 4  ;;  %s225_s22 = int_to_ptr.vmem [resolvable:$true] %s224_s22  ;;  %s493_s24 = int_to_ptr.vmem [resolvable:$true] %s236_s24 }
  0x2a   :  { %282 = vmatprep.subr.bf16.mxu0 %v421_v0  ;;  %v318_v9 = vld [vmem:[#allocation2] sm:$0xff]   ;;  %p370_p3 = scmp.lt.s32.totalorder %s225_s22, %s225_s22 }
  0x2b   :  { %v184_v38 = vld [vmem:[%s529_s2] sm:$0x1]  ;;  %v194_v39 = vsub.s32 0, %v193_v37  ;;  %s365_s2 = scalar_lea.vmem %s225_s22, 256 }
  0x2c   :  { %v188_v42 = vld [vmem:[%s530_s3] sm:$0x1]  ;;  %p366_p2 = scmp.ne.s32.totalorder %s225_s22, %s365_s2  ;;  %p371_p4 = scmp.lt.s32.totalorder %s365_s2, %s365_s2 }
  0x2d   :  { %283 = vmatpush3.bf16.msra.mxu0 %v311_v2 }
  0x2e   :  { %284 = vmatprep.subr.bf16.mxu0 %v421_v0  ;;  %p372_p5 = por %p371_p4, %p370_p3 }
  0x30   :  { %p373_p6 = pnand %p372_p5, %p366_p2 }
  0x31   :  { %285 = vmatpush3.bf16.msra.mxu0 %v312_v3 }
  0x32   :  { %286 = vmatprep.subr.bf16.mxu0 %v421_v0 }
  0x35   :  { %287 = vmatpush3.bf16.msra.mxu0 %v313_v4 }
  0x36   :  { %288 = vmatprep.subr.bf16.mxu0 %v421_v0 }
  0x39   :  { %289 = vmatpush3.bf16.msra.mxu0 %v314_v5 }
  0x3a   :  { %290 = vmatprep.subr.bf16.mxu0 %v421_v0 }
  0x3d   :  { %291 = vmatpush3.bf16.msra.mxu0 %v315_v6 }
  0x3e   :  { %292 = vmatprep.subr.bf16.mxu0 %v421_v0 }
  0x41   :  { %293 = vmatpush3.bf16.msra.mxu0 %v316_v7 }
  0x42   :  { %294 = vmatprep.subr.bf16.mxu0 %v421_v0 }
  0x45   :  { %295 = vmatpush3.bf16.msra.mxu0 %v317_v8 }
  0x48   :  { %297 = vmatmul.mubr.bf16.vlgmr.msra.gmra.mrb[0].mxu0 %v318_v9 }
 0x11b   :  { %v156_v10 = vpop.f32.mrb[0].mxu0 }
 0x11c   :  { %v298_v11 = vpop.f32.mrb[1].mxu0  ;;  %v171_v13 = vmul.f32 %v156_v10, %v156_v10 }
 0x11d   :  { %v159_v12 = vpop.f32.mrb[2].mxu0 }
 0x11e   :  { %v163_v14 = vadd.f32 %v159_v12, %v156_v10  ;;  %v172_v15 = vmul.f32 %v159_v12, %v159_v12  ;;  %v299_v16 = vpop.f32.mrb[3].mxu0 }
 0x120   :  { %v164_v17 = vrot.slane %v163_v14, 4  ;;  %v173_v18 = vadd.f32 %v172_v15, %v171_v13 }
 0x122   :  { %v165_v19 = vadd.f32 %v164_v17, %v163_v14  ;;  %v174_v20 = vrot.slane %v173_v18, 4 }
 0x124   :  { %v166_v21 = vrot.slane %v165_v19, 2  ;;  %v175_v22 = vadd.f32 %v174_v20, %v173_v18 }
 0x126   :  { %v167_v23 = vadd.f32 %v166_v21, %v165_v19  ;;  %v176_v24 = vrot.slane %v175_v22, 2 }
 0x128   :  { %v168_v25 = vrot.slane %v167_v23, 1  ;;  %v177_v26 = vadd.f32 %v176_v24, %v175_v22 }
 0x12a   :  { %v169_v27 = vadd.f32 %v168_v25, %v167_v23  ;;  %v178_v28 = vrot.slane %v177_v26, 1 }
 0x12c   :  { %v170_v29 = vmul.f32 0.125, %v169_v27  ;;  %v179_v30 = vadd.f32 %v178_v28, %v177_v26 }
 0x12e   :  { %v180_v31 = vmul.f32 0.125, %v179_v30  ;;  %v181_v32 = vmul.f32 %v170_v29, %v170_v29 }
 0x130   :  { %v182_v33 = vsub.f32 %v180_v31, %v181_v32 }
 0x132   :  { %v183_v34 = vmax.f32 %v182_v33, 0.0 }
 0x134   :  { %v185_v35 = vadd.f32 1e-05, %v183_v34 }
 0x136   :  { %319 = vrsqrt.f32 %v185_v35 }
 0x140   :  { %v320_v40 = vpop.eup %319 }
 0x141   :  { %v187_v41 = vmul.f32 %v320_v40, %v184_v38 }
 0x143   :  { %v189_v43 = vmul.f32 %v187_v41, %v170_v29  ;;  %v195_v44 = vrot.slane %v187_v41, %v194_v39 }
 0x145   :  { %v190_v45 = vsub.f32 %v188_v42, %v189_v43  ;;  %v197_v46 = vmul.f32 %v195_v44, %v156_v10  ;;  %v198_v47 = vmul.f32 %v195_v44, %v159_v12 }
 0x147   :  { %v203_v48 = vrot.slane %v190_v45, %v194_v39 }
 0x149   :  { %v205_v49 = vadd.f32 %v203_v48, %v197_v46  ;;  %v206_v50 = vadd.f32 %v203_v48, %v198_v47 }
 0x14b   :  { %208 = vst [vmem:[#allocation7 + $0x8] sm:$0xff] %v206_v50  ;;  %207 = vst [vmem:[#allocation7] sm:$0xff] %v205_v49  ;;  %v269_v51 = vpack.c.bf16 %v206_v50, %v205_v49 }
 0x14c   :  { %376 = shalt.err (!%p373_p6)
}
 0x14d   :  { %s377_s26 = scalar_lea.hbm %s531_s4, 256 }
 0x14e   :  { %p378_p7 = scmp.ne.s32.totalorder %s531_s4, %s377_s26  ;;  %p381_p8 = scmp.lt.u32.totalorder %s377_s26, %s531_s4 }
 0x150   :  { %p383_p9 = pnand %p381_p8, %p378_p7 }
 0x152   :  { %386 = shalt.err (!%p383_p9)
}
 0x153   :  { %s425_s8 = smov 128   ;;  %s426_s9 = smov 8   ;;  %270 = vst [vmem:[#allocation8] sm:$0xff] %v269_v51  }
 0x154   :  { %230 = dma.vmem_to_hbm [thread:$0]  %s225_s22, 256, %s531_s4, [#allocation4], %s425_s8, %s425_s8, %s426_s9  }
 0x155   :  { %s387_s12 = scalar_lea.vmem %s493_s24, 128  ;;  %p392_p11 = scmp.lt.s32.totalorder %s493_s24, %s493_s24 }
 0x156   :  { %p388_p10 = scmp.ne.s32.totalorder %s493_s24, %s387_s12  ;;  %p393_p12 = scmp.lt.s32.totalorder %s387_s12, %s387_s12 }
 0x158   :  { %p394_p13 = por %p393_p12, %p392_p11 }
 0x15a   :  { %p395_p0 = pnand %p394_p13, %p388_p10 }
 0x15c   :  { %398 = shalt.err (!%p395_p0)
}
 0x15d   :  { %s399_s15 = scalar_lea.hbm %s532_s5, 128 }
 0x15e   :  { %p400_p1 = scmp.ne.s32.totalorder %s532_s5, %s399_s15  ;;  %p403_p2 = scmp.lt.u32.totalorder %s399_s15, %s532_s5 }
 0x160   :  { %p405_p3 = pnand %p403_p2, %p400_p1 }
 0x162   :  { %408 = shalt.err (!%p405_p3)
}
 0x163   :  { %242 = dma.vmem_to_hbm [thread:$0]  %s493_s24, 128, %s532_s5, [#allocation9], %s418_s28, %s418_s28, %s419_s29  }
 0x164   :  { %413 = dma.done.wait [#allocation4], 256  }
 0x165   :  { %414 = vsyncadd [#allocation4], 4294967040 }
 0x166   :  { %415 = dma.done.wait [#allocation9], 128  }
 0x167   :  { %416 = vsyncadd [#allocation9], 4294967168 }
 0x168   :  { %249 = vsyncpa [#allocation3], 1 }
 0x169   :  { %250 = vsyncpa [#allocation6], 1 }
 0x16a   :  { %251 = vsyncpa [#allocation4], 1 }
 0x16b   :  { %252 = vsyncpa [#allocation9], 1 }

</bundles_post_ra>
